<compile_context>
chip_gen: v7x
topology: tpu7x:2x2x1
jax: 0.10.0
libtpu: 0.0.40
codegen_flags: <defaults>
</compile_context>

<pallas_src>
import functools

import jax
import jax.numpy as jnp
from jax.experimental import pallas as pl
from jax.experimental.pallas import tpu as pltpu


def _coop_kernel(x_ref, w_ref, b_ref, o_ref, *, num_experts, out_dim):
    # One fused MXU matmul over all experts: (TB, D) @ (D, E*O) -> (TB, E*O).
    y = jnp.dot(x_ref[...], w_ref[...], preferred_element_type=jnp.float32)
    y = jnp.maximum(y + b_ref[...], 0.0)            # center-folded bias + relu (VPU)
    # Sum the E lane-blocks of width `out_dim` (static unrolled, pure f32 VPU adds).
    acc = y[:, 0:out_dim]
    for e in range(1, num_experts):
        acc = acc + y[:, e * out_dim:(e + 1) * out_dim]
    o_ref[...] = acc.astype(o_ref.dtype)


def cooperation_forward(x, field_centers, weights, biases, *, block_b=None):
    """x: (B, D); field_centers: (E, D); weights: (E, D, O) (pre-transposed so an expert
    computes offs @ weights[e]); biases: (E, O).  Returns (B, O)."""
    B, D = x.shape
    E, Dc = field_centers.shape
    Ew, Dw, O = weights.shape
    assert Dc == D and Dw == D and Ew == E and biases.shape == (E, O)

    hp = jax.lax.Precision.HIGHEST
    # Fold the per-expert field center into the bias (exact algebraic rewrite).
    b_fold = biases - jnp.einsum("ed,edo->eo", field_centers, weights, precision=hp)  # (E, O)
    # Stack experts along the lane (output) axis: column e*O + o  <->  expert e, output o.
    w_all = jnp.transpose(weights, (1, 0, 2)).reshape(D, E * O)
    b_all = b_fold.reshape(1, E * O)

    if block_b is None:
        block_b = B if B <= 512 else 512
    if B % block_b != 0:
        block_b = B                                   # ragged B: fall back to one row-tile
    grid = (B // block_b,)

    kernel = functools.partial(_coop_kernel, num_experts=E, out_dim=O)
    return pl.pallas_call(
        kernel,
        out_shape=jax.ShapeDtypeStruct((B, O), x.dtype),
        grid_spec=pltpu.PrefetchScalarGridSpec(
            num_scalar_prefetch=0,
            grid=grid,
            in_specs=[
                pl.BlockSpec((block_b, D), lambda i: (i, 0)),    # x row-tile
                pl.BlockSpec((D, E * O), lambda i: (0, 0)),      # fused weights (loaded once)
                pl.BlockSpec((1, E * O), lambda i: (0, 0)),      # fused, center-folded bias
            ],
            out_specs=pl.BlockSpec((block_b, O), lambda i: (i, 0)),
        ),
        compiler_params=pltpu.CompilerParams(
            dimension_semantics=("parallel",),
        ),
    )(x, w_all, b_all)


def _reference(x, field_centers, weights, biases):
    # Pure-JAX reference matching the PyTorch module semantics.
    hp = jax.lax.Precision.HIGHEST
    offs = x[None, :, :] - field_centers[:, None, :]                  # (E, B, D)
    resp = jnp.einsum("ebd,edo->ebo", offs, weights, precision=hp)    # (E, B, O)
    return jnp.sum(jax.nn.relu(resp + biases[:, None, :]), axis=0)    # (B, O)


if __name__ == "__main__":
    # Small shapes consistent with the module; E*O = 128 -> lane-dense fused matmul.
    E, B, D, O = 4, 8, 32, 32

    key = jax.random.PRNGKey(0)
    k_x, k_c, k_w, k_b = jax.random.split(key, 4)

    def bf16_exact(a):
        # bf16-representable test data keeps the correctness check independent of the
        # MXU's f32 pass-count / default matmul precision (products are then exact).
        return a.astype(jnp.bfloat16).astype(jnp.float32)

    x = bf16_exact(jax.random.normal(k_x, (B, D), dtype=jnp.float32))
    field_centers = bf16_exact(jax.random.normal(k_c, (E, D), dtype=jnp.float32))
    # Deterministic per-expert Linear(D, O) parameters (nn.Linear-like scale).
    weights = bf16_exact(jax.random.uniform(k_w, (E, D, O), dtype=jnp.float32,
                                            minval=-1.0, maxval=1.0) / jnp.sqrt(D))
    biases = bf16_exact(jax.random.uniform(k_b, (E, O), dtype=jnp.float32,
                                           minval=-1.0, maxval=1.0) / jnp.sqrt(D))

    out = cooperation_forward(x, field_centers, weights, biases)
    out = jax.block_until_ready(out)

    ref = _reference(x, field_centers, weights, biases)
    assert out.shape == (B, O)
    assert jnp.allclose(out, ref, atol=1e-4, rtol=1e-4), "mismatch vs reference"

    print("KERNEL_OK")
</pallas_src>

<mosaic_0001>
module attributes {stable_mosaic.version = 11 : i64} {
  func.func @_coop_kernel(%arg0: i32, %arg1: memref<8x32xf32, #tpu.memory_space<vmem>>, %arg2: memref<32x128xf32, #tpu.memory_space<vmem>>, %arg3: memref<1x128xf32, #tpu.memory_space<vmem>>, %arg4: memref<8x32xf32, #tpu.memory_space<vmem>>) attributes {dimension_semantics = [#tpu.dimension_semantics<parallel>], iteration_bounds = array<i64: 1>, scalar_prefetch = 0 : i64, scratch_operands = 0 : i64, tpu.core_type = #tpu.core_type<tc>, window_params = [{transform_indices = @transform_0, window_bounds = array<i64: 8, 32>}, {pipeline_mode = #tpu.pipeline_mode<synchronous>, transform_indices = @transform_1, window_bounds = array<i64: 32, 128>}, {pipeline_mode = #tpu.pipeline_mode<synchronous>, transform_indices = @transform_2, window_bounds = array<i64: 1, 128>}, {transform_indices = @transform_3, window_bounds = array<i64: 8, 32>}]} {
    %c0 = arith.constant 0 : index
    %c0_0 = arith.constant 0 : index
    %0 = vector.load %arg1[%c0, %c0_0] : memref<8x32xf32, #tpu.memory_space<vmem>>, vector<8x32xf32>
    %c0_1 = arith.constant 0 : index
    %c0_2 = arith.constant 0 : index
    %1 = vector.load %arg2[%c0_1, %c0_2] : memref<32x128xf32, #tpu.memory_space<vmem>>, vector<32x128xf32>
    %cst = arith.constant dense<0.000000e+00> : vector<8x128xf32>
    %2 = tpu.matmul %0, %1, %cst {dimension_numbers = #tpu.dot_dimension_numbers<[1], [0], [0], [1], [0, 0, 1, 1], [], []>} : vector<8x32xf32>, vector<32x128xf32>, vector<8x128xf32> -> vector<8x128xf32>
    %c0_3 = arith.constant 0 : index
    %c0_4 = arith.constant 0 : index
    %3 = vector.load %arg3[%c0_3, %c0_4] : memref<1x128xf32, #tpu.memory_space<vmem>>, vector<1x128xf32>
    %4 = vector.broadcast %3 : vector<1x128xf32> to vector<8x128xf32>
    %5 = arith.addf %2, %4 : vector<8x128xf32>
    %cst_5 = arith.constant 0.000000e+00 : f32
    %6 = vector.broadcast %cst_5 : f32 to vector<8x128xf32>
    %7 = arith.maximumf %5, %6 : vector<8x128xf32>
    %8 = vector.extract_strided_slice %7 {offsets = [0, 0], sizes = [8, 32], strides = [1, 1]} : vector<8x128xf32> to vector<8x32xf32>
    %9 = vector.extract_strided_slice %7 {offsets = [0, 32], sizes = [8, 32], strides = [1, 1]} : vector<8x128xf32> to vector<8x32xf32>
    %10 = arith.addf %8, %9 : vector<8x32xf32>
    %11 = vector.extract_strided_slice %7 {offsets = [0, 64], sizes = [8, 32], strides = [1, 1]} : vector<8x128xf32> to vector<8x32xf32>
    %12 = arith.addf %10, %11 : vector<8x32xf32>
    %13 = vector.extract_strided_slice %7 {offsets = [0, 96], sizes = [8, 32], strides = [1, 1]} : vector<8x128xf32> to vector<8x32xf32>
    %14 = arith.addf %12, %13 : vector<8x32xf32>
    %c0_6 = arith.constant 0 : index
    %c0_7 = arith.constant 0 : index
    %15 = vector.load %arg4[%c0_6, %c0_7] : memref<8x32xf32, #tpu.memory_space<vmem>>, vector<8x32xf32>
    tpu.vector_store %arg4[%c0_6, %c0_7], %14 {strides = array<i32>} : memref<8x32xf32, #tpu.memory_space<vmem>>, vector<8x32xf32>,
    return
  }
  func.func @transform_0(%arg0: i32) -> (i32, i32) {
    %c0_i32 = arith.constant 0 : i32
    %c0_i32_0 = arith.constant 0 : i32
    return %arg0, %c0_i32 : i32, i32
  }
  func.func @transform_1(%arg0: i32) -> (i32, i32) {
    %c0_i32 = arith.constant 0 : i32
    %c0_i32_0 = arith.constant 0 : i32
    %c0_i32_1 = arith.constant 0 : i32
    return %c0_i32, %c0_i32_0 : i32, i32
  }
  func.func @transform_2(%arg0: i32) -> (i32, i32) {
    %c0_i32 = arith.constant 0 : i32
    %c0_i32_0 = arith.constant 0 : i32
    %c0_i32_1 = arith.constant 0 : i32
    return %c0_i32, %c0_i32_0 : i32, i32
  }
  func.func @transform_3(%arg0: i32) -> (i32, i32) {
    %c0_i32 = arith.constant 0 : i32
    %c0_i32_0 = arith.constant 0 : i32
    return %arg0, %c0_i32 : i32, i32
  }
}

</mosaic_0001>

<bundles_post_ra>
// kernel: tpu_custom_call.1
= control target key start
LH: loop header
LB: loop body
LE: loop exit
PB: predicated region body
PF: predicated region fallthrough
CT: control target
= control target key end

     0   :  { %8 = vsyncpa [#allocation3], 0  ;;  %s344_s0 = inlined_call_operand.hbm [shape: f32[8,32], index: 0, kind: input, shape index: {}]   ;;  %s345_s1 = inlined_call_operand.hbm [shape: f32[32,128], index: 1, kind: input, shape index: {}]   ;;  %s346_s2 = inlined_call_operand.vmem [shape: f32[1,128], index: 2, kind: input, shape index: {}]   ;;  %s347_s3 = inlined_call_operand.hbm [shape: f32[8,32], index: 3, kind: output, shape index: {}]  }
   0x1   :  { %9 = vsyncpa [#allocation6], 0 }
   0x2   :  { %10 = vsyncpa [#allocation4], 0  ;;  %s265_s12 = smov [#allocation2]   ;;  %s266_s14 = smov [#allocation5]  }
   0x3   :  { %s17_s13 = sshll.u32 %s265_s12, 4  ;;  %s26_s15 = sshll.u32 %s266_s14, 4  ;;  %s18_s13 = int_to_ptr.vmem [resolvable:$true] %s17_s13  ;;  %s296_s15 = int_to_ptr.vmem [resolvable:$true] %s26_s15 }
   0x4   :  { %s193_s18 = scalar_lea.hbm %s344_s0, 128 }
   0x5   :  { %p194_p0 = scmp.ne.s32.totalorder %s344_s0, %s193_s18  ;;  %p197_p1 = scmp.lt.u32.totalorder %s193_s18, %s344_s0 }
   0x7   :  { %p199_p2 = pnand %p197_p1, %p194_p0 }
   0x9   :  { %202 = shalt.err (!%p199_p2)
}
   0xa   :  { %s203_s23 = scalar_lea.vmem %s18_s13, 128  ;;  %p208_p4 = scmp.lt.s32.totalorder %s18_s13, %s18_s13 }
   0xb   :  { %p204_p3 = scmp.ne.s32.totalorder %s18_s13, %s203_s23  ;;  %p209_p5 = scmp.lt.s32.totalorder %s203_s23, %s203_s23 }
   0xd   :  { %p210_p6 = por %p209_p5, %p208_p4 }
   0xf   :  { %p211_p7 = pnand %p210_p6, %p204_p3 }
  0x11   :  { %214 = shalt.err (!%p211_p7)
}
  0x12   :  { %20 = dma.hbm_to_vmem [thread:$0]  %s344_s0, 128, %s18_s13, [#allocation3]  }
  0x13   :  { %s215_s28 = scalar_lea.hbm %s345_s1, 512 }
  0x14   :  { %p216_p8 = scmp.ne.s32.totalorder %s345_s1, %s215_s28  ;;  %p219_p9 = scmp.lt.u32.totalorder %s215_s28, %s345_s1 }
  0x16   :  { %p221_p10 = pnand %p219_p9, %p216_p8 }
  0x18   :  { %224 = shalt.err (!%p221_p10)
}
  0x19   :  { %s225_s6 = scalar_lea.vmem %s296_s15, 512  ;;  %p230_p12 = scmp.lt.s32.totalorder %s296_s15, %s296_s15 }
  0x1a   :  { %p226_p11 = scmp.ne.s32.totalorder %s296_s15, %s225_s6  ;;  %p231_p13 = scmp.lt.s32.totalorder %s225_s6, %s225_s6 }
  0x1c   :  { %p232_p0 = por %p231_p13, %p230_p12 }
  0x1e   :  { %p233_p1 = pnand %p232_p0, %p226_p11 }
  0x20   :  { %236 = shalt.err (!%p233_p1)
}
  0x21   :  { %s267_s0 = smov 128   ;;  %s268_s7 = smov 8  }
  0x22   :  { %32 = dma.hbm_to_vmem [thread:$0]  %s345_s1, 512, %s296_s15, [#allocation6], %s267_s0, %s267_s0, %s268_s7  }
  0x23   :  { %259 = dma.done.wait [#allocation3], 128  }
  0x24   :  { %260 = vsyncadd [#allocation3], 4294967168 }
  0x25   :  { %261 = dma.done.wait [#allocation6], 512  }
  0x26   :  { %262 = vsyncadd [#allocation6], 4294966784  ;;  %v269_v0 = vmov 0.0|0.0   ;;  %vm270_vm0 = vmmov 0   ;;  %v271_v1 = vmov 0.0   ;;  %v42_v2 = vld [vmem:[#allocation5] sm:$0xff] }
  0x27   :  { %176 = vmatprep.subr.bf16.mxu0 %v269_v0  ;;  %173 = vmatprep.mubr.msk.f32.mxu0 %vm270_vm0, %v271_v1  ;;  %v43_v3 = vld [vmem:[#allocation5 + $0x8] sm:$0xff]  ;;  %v44_v4 = vld [vmem:[#allocation5 + $0x10] sm:$0xff]  ;;  %v45_v6 = vld [vmem:[#allocation5 + $0x18] sm:$0xff]  ;;  %vm53_vm1 = vcmask 261120   ;;  %s272_s11 = smov 32   ;;  %s273_s12 = smov 96  }
  0x28   :  { %v177_v5 = vpack.c.bf16 %v43_v3, %v42_v2  ;;  %v180_v7 = vpack.c.bf16 %v45_v6, %v44_v4  ;;  %v41_v8 = vld [vmem:[#allocation2] sm:$0xff]  ;;  %s274_s13 = smov 64   ;;  %s275_s14 = smov [#allocation7]  }
  0x29   :  { %v158_v9 = vld [vmem:[%s346_s2] ss:$0 sm:$0xff]  ;;  %s148_s15 = sshll.u32 %s275_s14, 4  ;;  %s149_s15 = int_to_ptr.vmem [resolvable:$true] %s148_s15 }
  0x2a   :  { %178 = vmatpush3.bf16.msra.mxu0 %v177_v5  ;;  %s237_s2 = scalar_lea.vmem %s149_s15, 128  ;;  %p242_p3 = scmp.lt.s32.totalorder %s149_s15, %s149_s15 }
  0x2b   :  { %179 = vmatprep.subr.bf16.mxu0 %v269_v0  ;;  %p238_p2 = scmp.ne.s32.totalorder %s149_s15, %s237_s2  ;;  %p243_p4 = scmp.lt.s32.totalorder %s237_s2, %s237_s2 }
  0x2d   :  { %p244_p5 = por %p243_p4, %p242_p3 }
  0x2e   :  { %181 = vmatpush3.bf16.msra.mxu0 %v180_v7 }
  0x2f   :  { %p245_p6 = pnand %p244_p5, %p238_p2 }
  0x31   :  { %174 = vmatmul.mubr.msk.f32.vlgmr.msra.gmra.mrb[0].mxu0 %vm53_vm1, %v41_v8 }
 0x104   :  { %v123_v10 = vpop.f32.mrb[0].mxu0 }
 0x105   :  { %v124_v11 = vadd.f32 %v158_v9, %v123_v10  ;;  %v175_v12 = vpop.f32.mrb[1].mxu0 }
 0x107   :  { %v127_v13 = vmax.f32 %v124_v11, 0.0 }
 0x109   :  { %137 = vrot.lane.b32.xlu1 %v127_v13, %s272_s11  ;;  %129 = vrot.lane.b32.xlu0 %v127_v13, %s273_s12 }
 0x10d   :  { %133 = vrot.lane.b32.xlu0 %v127_v13, %s274_s13 }
 0x17b   :  { %v130_v14 = vpop.permute.xlu0 %129  ;;  %v138_v18 = vpop.permute.xlu1 %137 }
 0x17c   :  { %v132_v15 = vadd.f32 %v130_v14, %v127_v13 }
 0x17f   :  { %v134_v16 = vpop.permute.xlu0 %133 }
 0x180   :  { %v136_v17 = vadd.f32 %v134_v16, %v132_v15 }
 0x182   :  { %v140_v19 = vadd.f32 %v138_v18, %v136_v17 }
 0x184   :  { %141 = vst.msk [vmem:[#allocation7] sm:$0xff] %vm53_vm1, %v140_v19 }
 0x185   :  { %248 = shalt.err (!%p245_p6)
}
 0x186   :  { %s249_s18 = scalar_lea.hbm %s347_s3, 128 }
 0x187   :  { %p250_p7 = scmp.ne.s32.totalorder %s347_s3, %s249_s18  ;;  %p253_p8 = scmp.lt.u32.totalorder %s249_s18, %s347_s3 }
 0x189   :  { %p255_p9 = pnand %p253_p8, %p250_p7 }
 0x18b   :  { %258 = shalt.err (!%p255_p9)
}
 0x18c   :  { %151 = dma.vmem_to_hbm [thread:$0]  %s149_s15, 128, %s347_s3, [#allocation4]  }
 0x18d   :  { %263 = dma.done.wait [#allocation4], 128  }
 0x18e   :  { %264 = vsyncadd [#allocation4], 4294967168 }
 0x18f   :  { %155 = vsyncpa [#allocation3], 1 }
 0x190   :  { %156 = vsyncpa [#allocation6], 1 }
 0x191   :  { %157 = vsyncpa [#allocation4], 1 }

</bundles_post_ra>
